<compile_context>
chip_gen: v5e
topology: v5e:2x2
jax: 0.10.0
libtpu: 0.0.40
codegen_flags: <defaults>
</compile_context>

<pallas_src>
import jax
import jax.numpy as jnp
from jax.experimental import pallas as pl
from jax.experimental.pallas import tpu as pltpu


# ---------------------------------------------------------------------------
# Kernel: out = gate*x + (1-gate)*y  ==  y + gate*(x - y)
# ---------------------------------------------------------------------------
def _gate_blend_kernel(g_ref, x_ref, y_ref, o_ref):
    # g_ref : (B, C)  full gate table, resident in VMEM for the whole grid
    # x_ref / y_ref / o_ref : (T1, T2, C)  (batch dim squeezed out of the block)
    b = pl.program_id(2)
    g = g_ref[pl.ds(b, 1), :].reshape(1, 1, -1)      # (1, 1, C) -> broadcasts
    x = x_ref[...]
    y = y_ref[...]
    o_ref[...] = (y + g * (x - y)).astype(o_ref.dtype)


# ---------------------------------------------------------------------------
# Tile selection (dtype-aware, byte-budgeted, divisor-preferring)
# ---------------------------------------------------------------------------
_BLOCK_BUDGET = 4 * 1024 * 1024   # bytes per padded x/y/out block (~85%+ of HBM roofline)


def _largest_divisor_leq(n, cap):
    cap = max(1, min(n, cap))
    for d in range(cap, 0, -1):
        if n % d == 0:
            return d
    return 1


def _choose_tiles(S1, S2, itemsize):
    pack = 8 * max(1, 4 // itemsize)          # sublane packing: 8 f32, 16 bf16, 32 int8
    lane = 128                                # C = 97 pads to 128 lanes in VMEM
    s2_pad = -(-S2 // pack) * pack
    row_bytes = s2_pad * lane * itemsize      # one S1-row of a block, VMEM-padded

    if row_bytes <= _BLOCK_BUDGET:
        t2 = S2                               # keep S2 whole -> full-dim block, no (8,128) issue
        t1_cap = max(1, _BLOCK_BUDGET // row_bytes)
        if S1 > 1:
            # Guarantee >= 2 tiles along S1 so v7x's 2 TensorCores always have a
            # large parallel axis to split, even when B == 1 (costs <= 1 extra step).
            t1_cap = min(t1_cap, -(-S1 // 2))
        if S1 <= t1_cap:
            t1 = S1
        else:
            t1 = _largest_divisor_leq(S1, t1_cap)
            if t1 < max(1, t1_cap // 2):      # divisors too small -> accept a ragged last tile
                t1 = t1_cap
    else:
        # A single S1-row already exceeds the budget: tile S2 as well.
        t1 = 1
        cap_sub = max(pack, (_BLOCK_BUDGET // (lane * itemsize)) // pack * pack)
        t2 = 0
        for m in range(cap_sub // pack, 0, -1):
            if S2 % (m * pack) == 0:
                t2 = m * pack
                break
        if t2 == 0 or t2 < max(pack, cap_sub // 2):
            t2 = cap_sub                      # ragged last tile along S2 (correct, masked stores)
    return t1, t2


# ---------------------------------------------------------------------------
# Forward wrapper
# ---------------------------------------------------------------------------
def gate_forward(x, y, cls, w1, b1, w2, b2):
    """Pallas implementation of Gate.forward.

    x, y : [B, S1, S2, 97]
    cls  : [B, H]
    w1   : [H, H//16], b1 : [H//16]   (weights stored as [in, out], i.e. nn.Linear W.T)
    w2   : [H//16, 97], b2 : [97]
    """
    B, S1, S2, C = x.shape
    assert y.shape == x.shape

    # --- tiny gate MLP in plain XLA (essentially zero MXU work; not worth the kernel) ---
    h = jnp.dot(cls.astype(jnp.float32), w1.astype(jnp.float32)) + b1.astype(jnp.float32)
    h = jnp.where(h >= 0, h, 0.1 * h)                         # LeakyReLU(0.1)
    gate = jax.nn.sigmoid(jnp.dot(h, w2.astype(jnp.float32)) + b2.astype(jnp.float32))
    gate = gate.astype(x.dtype)                               # blend in the streaming dtype

    t1, t2 = _choose_tiles(S1, S2, x.dtype.itemsize)
    grid = (pl.cdiv(S1, t1), pl.cdiv(S2, t2), B)

    out = pl.pallas_call(
        _gate_blend_kernel,
        out_shape=jax.ShapeDtypeStruct((B, S1, S2, C), x.dtype),
        grid=grid,
        in_specs=[
            # Full gate table; constant index_map -> fetched once, stays resident.
            pl.BlockSpec((B, C), lambda i, j, b: (0, 0)),
            pl.BlockSpec((pl.Squeezed(), t1, t2, C), lambda i, j, b: (b, i, j, 0)),
            pl.BlockSpec((pl.Squeezed(), t1, t2, C), lambda i, j, b: (b, i, j, 0)),
        ],
        out_specs=pl.BlockSpec((pl.Squeezed(), t1, t2, C), lambda i, j, b: (b, i, j, 0)),
        compiler_params=pltpu.CompilerParams(
            dimension_semantics=("parallel", "parallel", "parallel"),
            # 3 streams x 2 buffers x <=4 MiB blocks ~= 24 MiB; 48 MiB cap is safe on
            # v5e/v6e (128 MiB) and v7x (64 MiB physical).
            vmem_limit_bytes=48 * 1024 * 1024,
        ),
        # TODO(synk): if the caller never reuses x after the blend, pass
        # input_output_aliases={1: 0} to write the result in place.
    )(gate, x, y)

    return out


# ---------------------------------------------------------------------------
# Pure-JAX reference
# ---------------------------------------------------------------------------
def gate_reference(x, y, cls, w1, b1, w2, b2):
    h = cls @ w1 + b1
    h = jnp.where(h >= 0, h, 0.1 * h)
    g = jax.nn.sigmoid(h @ w2 + b2)
    g = g[:, None, None, :]
    return g * x + (1.0 - g) * y


if __name__ == "__main__":
    hid_dim = 32                 # hid_dim // 16 = 2
    H16 = hid_dim // 16
    C = 97                       # fixed by the module (linear2 out features)

    key = jax.random.PRNGKey(0)
    k_w1, k_b1, k_w2, k_b2, k_cls, k_x, k_y = jax.random.split(key, 7)

    # Deterministic parameters (stored as [in, out], i.e. W.T of nn.Linear).
    w1 = jax.random.normal(k_w1, (hid_dim, H16), dtype=jnp.float32) * 0.1
    b1 = jax.random.normal(k_b1, (H16,), dtype=jnp.float32) * 0.1
    w2 = jax.random.normal(k_w2, (H16, C), dtype=jnp.float32) * 0.1
    b2 = jax.random.normal(k_b2, (C,), dtype=jnp.float32) * 0.1

    # --- case 1: f32, B=2, small spatial dims (exact check) ---
    B, S1, S2 = 2, 4, 4
    cls = jax.random.normal(k_cls, (B, hid_dim), dtype=jnp.float32)
    x = jax.random.normal(k_x, (B, S1, S2, C), dtype=jnp.float32)
    y = jax.random.normal(k_y, (B, S1, S2, C), dtype=jnp.float32)

    out = jax.block_until_ready(gate_forward(x, y, cls, w1, b1, w2, b2))
    ref = gate_reference(x, y, cls, w1, b1, w2, b2)
    assert out.shape == (B, S1, S2, C)
    assert jnp.allclose(out, ref, atol=1e-5, rtol=1e-5)

    # --- case 2: bf16, B=1 (exercises bf16 packing, divisor tiling, B==1 grid) ---
    B2, S1b, S2b = 1, 24, 8
    cls2 = jax.random.normal(k_cls, (B2, hid_dim), dtype=jnp.float32)
    x2 = jax.random.normal(k_x, (B2, S1b, S2b, C), dtype=jnp.float32).astype(jnp.bfloat16)
    y2 = jax.random.normal(k_y, (B2, S1b, S2b, C), dtype=jnp.float32).astype(jnp.bfloat16)

    out2 = jax.block_until_ready(gate_forward(x2, y2, cls2, w1, b1, w2, b2))
    ref2 = gate_reference(x2.astype(jnp.float32), y2.astype(jnp.float32), cls2, w1, b1, w2, b2)
    assert out2.dtype == jnp.bfloat16
    # bf16 blend vs f32 reference: a few bf16 ulps of O(1..8) magnitudes.
    assert jnp.allclose(out2.astype(jnp.float32), ref2, atol=1.5e-1, rtol=5e-2)

    print("KERNEL_OK")
</pallas_src>

<mosaic_0001>
module attributes {stable_mosaic.version = 11 : i64} {
  func.func @_gate_blend_kernel(%arg0: i32, %arg1: i32, %arg2: i32, %arg3: memref<2x97xf32, #tpu.memory_space<vmem>>, %arg4: memref<1x2x4x97xf32, #tpu.memory_space<vmem>>, %arg5: memref<1x2x4x97xf32, #tpu.memory_space<vmem>>, %arg6: memref<1x2x4x97xf32, #tpu.memory_space<vmem>>) attributes {dimension_semantics = [#tpu.dimension_semantics<parallel>, #tpu.dimension_semantics<parallel>, #tpu.dimension_semantics<parallel>], iteration_bounds = array<i64: 2, 1, 2>, scalar_prefetch = 0 : i64, scratch_operands = 0 : i64, tpu.core_type = #tpu.core_type<tc>, window_params = [{pipeline_mode = #tpu.pipeline_mode<synchronous>, transform_indices = @transform_0, window_bounds = array<i64: 2, 97>}, {transform_indices = @transform_1, window_bounds = array<i64: 1, 2, 4, 97>}, {transform_indices = @transform_2, window_bounds = array<i64: 1, 2, 4, 97>}, {transform_indices = @transform_3, window_bounds = array<i64: 1, 2, 4, 97>}]} {
    %0 = arith.index_cast %arg2 : i32 to index
    %c0 = arith.constant 0 : index
    %1 = vector.load %arg3[%0, %c0] : memref<2x97xf32, #tpu.memory_space<vmem>>, vector<1x97xf32>
    %2 = vector.shape_cast %1 : vector<1x97xf32> to vector<1x1x97xf32>
    %c0_0 = arith.constant 0 : index
    %c0_1 = arith.constant 0 : index
    %c0_2 = arith.constant 0 : index
    %c0_3 = arith.constant 0 : index
    %3 = vector.load %arg4[%c0_0, %c0_1, %c0_2, %c0_3] : memref<1x2x4x97xf32, #tpu.memory_space<vmem>>, vector<1x2x4x97xf32>
    %4 = vector.shape_cast %3 : vector<1x2x4x97xf32> to vector<2x4x97xf32>
    %c0_4 = arith.constant 0 : index
    %c0_5 = arith.constant 0 : index
    %c0_6 = arith.constant 0 : index
    %c0_7 = arith.constant 0 : index
    %5 = vector.load %arg5[%c0_4, %c0_5, %c0_6, %c0_7] : memref<1x2x4x97xf32, #tpu.memory_space<vmem>>, vector<1x2x4x97xf32>
    %6 = vector.shape_cast %5 : vector<1x2x4x97xf32> to vector<2x4x97xf32>
    %7 = arith.subf %4, %6 : vector<2x4x97xf32>
    %8 = vector.broadcast %2 : vector<1x1x97xf32> to vector<2x4x97xf32>
    %9 = arith.mulf %8, %7 : vector<2x4x97xf32>
    %10 = arith.addf %6, %9 : vector<2x4x97xf32>
    %c0_8 = arith.constant 0 : index
    %c0_9 = arith.constant 0 : index
    %c0_10 = arith.constant 0 : index
    %c0_11 = arith.constant 0 : index
    %11 = vector.load %arg6[%c0_8, %c0_9, %c0_10, %c0_11] : memref<1x2x4x97xf32, #tpu.memory_space<vmem>>, vector<1x2x4x97xf32>
    %12 = vector.shape_cast %11 : vector<1x2x4x97xf32> to vector<2x4x97xf32>
    %13 = vector.shape_cast %10 : vector<2x4x97xf32> to vector<1x2x4x97xf32>
    tpu.vector_store %arg6[%c0_8, %c0_9, %c0_10, %c0_11], %13 {strides = array<i32>} : memref<1x2x4x97xf32, #tpu.memory_space<vmem>>, vector<1x2x4x97xf32>,
    return
  }
  func.func @transform_0(%arg0: i32, %arg1: i32, %arg2: i32) -> (i32, i32) {
    %c0_i32 = arith.constant 0 : i32
    %c0_i32_0 = arith.constant 0 : i32
    %c0_i32_1 = arith.constant 0 : i32
    return %c0_i32, %c0_i32_0 : i32, i32
  }
  func.func @transform_1(%arg0: i32, %arg1: i32, %arg2: i32) -> (i32, i32, i32, i32) {
    %c0_i32 = arith.constant 0 : i32
    %c0_i32_0 = arith.constant 0 : i32
    return %arg2, %arg0, %arg1, %c0_i32 : i32, i32, i32, i32
  }
  func.func @transform_2(%arg0: i32, %arg1: i32, %arg2: i32) -> (i32, i32, i32, i32) {
    %c0_i32 = arith.constant 0 : i32
    %c0_i32_0 = arith.constant 0 : i32
    return %arg2, %arg0, %arg1, %c0_i32 : i32, i32, i32, i32
  }
  func.func @transform_3(%arg0: i32, %arg1: i32, %arg2: i32) -> (i32, i32, i32, i32) {
    %c0_i32 = arith.constant 0 : i32
    %c0_i32_0 = arith.constant 0 : i32
    return %arg2, %arg0, %arg1, %c0_i32 : i32, i32, i32, i32
  }
}

</mosaic_0001>

<bundles_post_ra>
// kernel: tpu_custom_call.1
= control target key start
LH: loop header
LB: loop body
LE: loop exit
PB: predicated region body
PF: predicated region fallthrough
CT: control target
= control target key end

     0   :  { %s973_s0 = inlined_call_operand.hbm [shape: f32[2,97], index: 0, kind: input, shape index: {}]   ;;  %s974_s1 = inlined_call_operand.hbm [shape: f32[2,4,4,97], index: 1, kind: input, shape index: {}]   ;;  %s975_s2 = inlined_call_operand.hbm [shape: f32[2,4,4,97], index: 2, kind: input, shape index: {}]   ;;  %s976_s3 = inlined_call_operand.hbm [shape: f32[2,4,4,97], index: 3, kind: output, shape index: {}]  }
   0x1   :  { %978 = sst [smem:[#allocation12_spill]] %s973_s0 }
   0x2   :  { %8 = vsyncpa [#allocation3], 0 }
   0x3   :  { %9 = vsyncpa [#allocation6], 0 }
   0x4   :  { %11 = vsyncpa [#allocation6 + $0x1], 0 }
   0x5   :  { %12 = vsyncpa [#allocation4], 0 }
   0x6   :  { %14 = vsyncpa [#allocation4 + $0x1], 0  ;;  %s794_s12 = smov 0   ;;  %s796_s13 = smov 0  }
   0x7   :  { %s798_s14 = smov 0   ;;  %s800_s15 = smov 0  }
   0x8   :  { %s802_s16 = smov 0   ;;  %s804_s17 = smov 0  }
   0x9   :  { %s806_s18 = smov 0   ;;  %s808_s19 = smov 0  }
   0xa LB: > { %s32_s20 = sadd.s32 1, %s759_s17  ;;  %s39_s21 = sadd.s32 1, %s763_s18  ;;  %s767_s19 = sphi %s808_s19, %s20_s19   ;;  %s763_s18 = sphi %s806_s18, %s992_s18   ;;  %s759_s17 = sphi %s804_s17, %s991_s17   ;;  %s755_s16 = sphi %s802_s16, %s990_s16   ;;  %s751_s15 = sphi %s800_s15, %s989_s15   ;;  %s747_s14 = sphi %s798_s14, %s988_s14   ;;  %s743_s13 = sphi %s796_s13, %s987_s13   ;;  %s739_s12 = sphi %s794_s12, %s986_s12  }
   0xb   : > { %p33_p0 = scmp.ge.s32.totalorder %s32_s20, 2  ;;  %s71_s22 = sadd.s32 1, %s747_s14 }
   0xc   : > { %p78_p1 = scmp.ne.s32.totalorder %s747_s14, %s743_s13  ;;  %p79_p2 = scmp.eq.s32.totalorder %s767_s19, 0 }
   0xd   : > { %s994_s20 = smov (%p33_p0, %s32_s20), 0  ;;  %s996_s21 = smov (!%p33_p0, %s39_s21), %s763_s18 }
   0xe   : > { %s64_s23 = ssub.s32 %s759_s17, %s994_s20  ;;  %p848_p3 = por %p79_p2, %p78_p1 }
   0xf   : > { %p41_p4 = scmp.ge.s32.totalorder %s996_s21, 2  ;;  %p502_p5 = scmp.lt.s32.totalorder %s767_s19, 4 }
  0x10   : > { %s180_s25 = sand.u32 1, %s767_s19   ;;  %s182_s26 = sand.u32 1, %s747_s14  }
  0x11   : > { %s998_s21 = smov (%p41_p4, %s996_s21), 0  ;;  %s457_s28 = sshll.u32 %s182_s26, 3 }
  0x12   : > { %s65_s27 = ssub.s32 %s763_s18, %s998_s21  ;;  %s458_s30 = sshll.u32 %s763_s18, 1 }
  0x13   : > { %s66_s29 = sor.u32 %s65_s27, %s64_s23  ;;  %s459_s4 = sshll.u32 %s759_s17, 2 }
  0x14   : > { %p69_p6 = scmp.eq.s32.totalorder %s66_s29, 0  ;;  %s184_s5 = scalar_lea.vmem [#allocation5], %s457_s28 }
  0x15   : > { %s195_s6 = sshll.u32 %s184_s5, 4  ;;  %s190_s8 = sadd.s32 %s459_s4, %s458_s30  ;;  %s196_s6 = int_to_ptr.vmem [resolvable:$true] %s195_s6 }
  0x16   : > { %s862_s7 = scalar_select %p69_p6, %s747_s14, %s71_s22  }
  0x17   : > { %s460_s9 = sshll.u32 %s190_s8, 2  ;;  %p868_p7 = pnand %p502_p5, %p848_p3 }
  0x18   : > { %s192_s26 = scalar_lea.hbm %s974_s1, %s460_s9  ;;  %s875_s27 = scalar_lea.sflag [#allocation6], %s180_s25 }
  0x19   : > { %s193_s22 = sshll.u32 %s192_s26, 4  ;;  %s769_s29 = smov 64   ;;  %s194_s22 = int_to_ptr.hbm [resolvable:$true] %s193_s22 }
  0x1a   : > { %s770_s24 = smov 4   ;;  %s217_s5 = scalar_lea.hbm %s975_s2, %s460_s9 }
  0x1b   : > { %493 = dma.hbm_to_vmem [thread:$0]  (!%p868_p7), %s194_s22, 128, %s196_s6, %s875_s27, %s769_s29, %s769_s29, %s770_s24  }
  0x1c   : > { %s218_s8 = sshll.u32 %s217_s5, 4  ;;  %s209_s25 = scalar_lea.vmem [#allocation7], %s457_s28  ;;  %s219_s8 = int_to_ptr.hbm [resolvable:$true] %s218_s8 }
  0x1d   : > { %s220_s11 = sshll.u32 %s209_s25, 4  ;;  %s452_s23 = sadd.s32 4294967295, %s767_s19   ;;  %s221_s11 = int_to_ptr.vmem [resolvable:$true] %s220_s11 }
  0x1e   : > { %s453_s26 = sadd.s32 4294967294, %s767_s19   ;;  %p84_p8 = scmp.ne.s32.totalorder %s743_s13, %s739_s12 }
  0x1f   : > { %p85_p9 = scmp.eq.s32.totalorder %s452_s23, 0  ;;  %p142_p10 = scmp.eq.s32.totalorder %s452_s23, 3 }
  0x20   : > { %p148_p11 = scmp.eq.s32.totalorder %s453_s26, 3  ;;  %p454_p13 = scmp.ge.s32.totalorder %s767_s19, 1 }
  0x21   : > { %p891_p12 = por %p85_p9, %p84_p8  ;;  %p899_p0 = por %p142_p10, %p78_p1 }
  0x22   : > { %p903_p2 = por %p148_p11, %p84_p8  ;;  %p155_p3 = scmp.lt.s32.totalorder %s767_s19, 5 }
  0x23   : > { %s984_s0 = sld [smem:[#allocation12_spill]]  ;;  %s771_s5 = smov [#allocation2]  }
  0x24   : > { %p156_p4 = pnand %p454_p13, %p155_p3  ;;  %s169_s25 = sshll.u32 %s771_s5, 4  ;;  %s170_s25 = int_to_ptr.vmem [resolvable:$true] %s169_s25 }
  0x25   : > { %496 = dma.hbm_to_vmem [thread:$0]  (!%p868_p7), %s219_s8, 128, %s221_s11, %s875_s27, %s769_s29, %s769_s29, %s770_s24  }
  0x26   : > { %p486_p5 = pneg %p156_p4  ;;  %232 = sbr.rel (%p156_p4) target bundleno = 67 (0x43), region = 32 }
  0x28   : > { %p487_p1 = pnand %p486_p5, %p85_p9 }
  0x29   : > { %s167_s4 = sshll.u32 %s984_s0, 4  ;;  %s168_s4 = int_to_ptr.hbm [resolvable:$true] %s167_s4 }
  0x2a   : > { %489 = dma.hbm_to_vmem [thread:$0]  (!%p487_p1), %s168_s4, 32, %s170_s25, [#allocation3]  }
  0x2b   : > { %726 = dma.done.wait (%p85_p9), [#allocation3], 32  }
  0x2c   : > { %728 = vsyncadd (%p85_p9), [#allocation3], 4294967264  ;;  %s239_s26 = sand.u32 1, %s452_s23   ;;  %s977_s22 = sand.u32 1, %s743_s13  }
  0x2d   : > { %s467_s10 = sshll.u32 %s977_s22, 3  ;;  %s240_s30 = scalar_lea.sflag [#allocation6], %s239_s26 }
  0x2e   : > { %s243_s5 = scalar_lea.vmem [#allocation5], %s467_s10 }
  0x2f   : > { %730 = dma.done.wait (%p891_p12), %s240_s30, 256  }
  0x30   : > { %732 = vsyncadd (%p891_p12), %s240_s30, 4294967040  ;;  %s471_s27 = sshll.u32 %s755_s16, 1  ;;  %s472_s29 = sshll.u32 %s751_s15, 2  ;;  %v287_v0 = vld [vmem:[%s243_s5] sm:$0xf]  ;;  %vm298_vm0 = vcmask 789504  }
  0x31   : > { %s314_s24 = sadd.s32 %s472_s29, %s471_s27  ;;  %s281_s11 = scalar_lea.vmem [#allocation8], %s467_s10  ;;  %v288_v4 = vld [vmem:[%s243_s5 + $0x4] sm:$0xf] }
  0x32   : > { %s473_s8 = sshll.u32 %s314_s24, 2  ;;  %s317_s4 = sshll.u32 %s281_s11, 4  ;;  %s318_s4 = int_to_ptr.vmem [resolvable:$true] %s317_s4 }
  0x33   : > { %s285_s23 = scalar_lea.vmem [#allocation2], %s751_s15  ;;  %s253_s25 = scalar_lea.vmem [#allocation7], %s467_s10 }
  0x34   : > { %v289_v1 = vld [vmem:[%s253_s25] sm:$0xf]  ;;  %s316_s0 = scalar_lea.hbm %s976_s3, %s473_s8  ;;  %v574_v3 = vld [vmem:[%s285_s23] ss:$0 sm:$0xff]  ;;  %s985_s15 = sand.u32 1, %s743_s13  }
  0x35   : > { %v291_v2 = vsub.f32 %v287_v0, %v289_v1  ;;  %v290_v5 = vld [vmem:[%s253_s25 + $0x4] sm:$0xf]  ;;  %s319_s16 = sshll.u32 %s316_s0, 4  ;;  %s302_s6 = scalar_lea.sflag [#allocation4], %s985_s15  ;;  %s320_s16 = int_to_ptr.hbm [resolvable:$true] %s319_s16 }
  0x36   : > { %v292_v6 = vsub.f32 %v288_v4, %v290_v5  ;;  %s679_s22 = sshra.s32 %s320_s16, 4  ;;  %s685_s0 = scalar_lea.hbm %s976_s3, 32  ;;  %s680_s22 = int_to_ptr.hbm [resolvable:$true] %s679_s22 }
  0x37   : > { %v294_v7 = vmul.f32 %v574_v3, %v291_v2  ;;  %s681_s10 = scalar_lea.hbm %s680_s22, 8  ;;  %p686_p9 = scmp.lt.s32.totalorder %s680_s22, %s976_s3 }
  0x38   : > { %v295_v8 = vmul.f32 %v574_v3, %v292_v6  ;;  %p682_p6 = scmp.ne.s32.totalorder %s680_s22, %s681_s10  ;;  %p687_p10 = scmp.lt.s32.totalorder %s685_s0, %s681_s10 }
  0x39   : > { %v296_v9 = vadd.f32 %v294_v7, %v289_v1 }
  0x3a   : > { %v297_v10 = vadd.f32 %v295_v8, %v290_v5  ;;  %p683_p7 = pnand %p682_p6, %p899_p0  ;;  %p688_p11 = por %p687_p10, %p686_p9 }
  0x3b   : > { %299 = vst.msk [vmem:[%s281_s11] sm:$0xf] %vm298_vm0, %v296_v9 }
  0x3c   : > { %300 = vst.msk [vmem:[%s281_s11 + $0x4] sm:$0xf] %vm298_vm0, %v297_v10  ;;  %p684_p8 = pneg %p683_p7 }
  0x3e   : > { %p689_p12 = pnand %p688_p11, %p684_p8 }
  0x40   : > { %692 = shalt.err (!%p689_p12)
}
  0x41   : > { %s772_s24 = smov 64   ;;  %s773_s8 = smov 4  }
  0x42   : > { %484 = dma.vmem_to_hbm [thread:$0]  (%p899_p0), %s318_s4, 128, %s320_s16, %s302_s6, %s772_s24, %s772_s24, %s773_s8  }
  0x43 PF: > { %p504_p13 = scmp.ge.s32.totalorder %s767_s19, 2  ;;  %s334_s11 = sand.u32 1, %s739_s12  }
  0x44   : > { %s335_s23 = scalar_lea.sflag [#allocation4], %s334_s11 }
  0x45   : > { %p498_p3 = pnand %p504_p13, %p903_p2 }
  0x47   : > { %p499_p4 = pneg %p498_p3 }
  0x49   : > { %734 = dma.done.wait (%p499_p4), %s335_s23, 128  }
  0x4a   : > { %736 = vsyncadd (%p499_p4), %s335_s23, 4294967168  ;;  %s20_s19 = sadd.s32 1, %s767_s19   ;;  %s986_s12 = smov %s743_s13 }
  0x4b   : > { %p17_p5 = scmp.ge.s32.totalorder %s20_s19, 6   ;;  %s987_s13 = smov %s747_s14 }
  0x4c   : > { %s988_s14 = smov %s862_s7  ;;  %s989_s15 = smov %s759_s17 }
  0x4d   : > { %s990_s16 = smov %s763_s18  ;;  %s991_s17 = smov %s994_s20 }
  0x4e   : > { %s992_s18 = smov %s998_s21  ;;  %19 = sbr.rel (!%p17_p5) target bundleno = 10 (0xa), region = 94 }
  0x53   :  { %341 = vsyncpa [#allocation3], 1 }
  0x54   :  { %343 = vsyncpa [#allocation3 + $0x1], 1 }
  0x55   :  { %344 = vsyncpa [#allocation6], 1 }
  0x56   :  { %346 = vsyncpa [#allocation6 + $0x1], 1 }
  0x57   :  { %347 = vsyncpa [#allocation4], 1 }
  0x58   :  { %349 = vsyncpa [#allocation4 + $0x1], 1 }

</bundles_post_ra>
